<compile_context>
chip_gen: v7x
topology: tpu7x:2x2x1
jax: 0.10.0
libtpu: 0.0.40
codegen_flags: <defaults>
</compile_context>

<pallas_src>
import functools

import jax
import jax.numpy as jnp
from jax.experimental import pallas as pl
from jax.experimental.pallas import tpu as pltpu


# ----------------------------------------------------------------------------
# Kernels
# ----------------------------------------------------------------------------
def linear_kernel(seq_ref, wT_ref, h_ref):
    # seq_ref: (TM, Fin_pad), wT_ref: (Fin_pad, Fout_pad), h_ref: (TM, Fout_pad)
    h_ref[...] = jnp.dot(
        seq_ref[...], wT_ref[...], preferred_element_type=jnp.float32
    ).astype(h_ref.dtype)


def spmm_bias_prelu_kernel(adj_ref, h_ref, bias_ref, alpha_ref, out_ref, acc_ref):
    # adj_ref:  (TM, TK)   streamed tile of adjacency
    # h_ref:    (TK, TN)   streamed tile of seq @ W^T
    # bias_ref: (1, TN)    f32
    # alpha_ref:(1,)       SMEM scalar (PReLU slope)
    # out_ref:  (TM, TN)   output tile (out_dtype)
    # acc_ref:  (TM, TN)   f32 VMEM accumulator scratch
    k = pl.program_id(2)

    @pl.when(k == 0)
    def _():
        acc_ref[...] = jnp.zeros_like(acc_ref)

    acc_ref[...] += jnp.dot(
        adj_ref[...], h_ref[...], preferred_element_type=jnp.float32
    )

    @pl.when(k == pl.num_programs(2) - 1)
    def _():
        out = acc_ref[...] + bias_ref[...]            # f32 epilogue, once per tile
        alpha = alpha_ref[0]
        out_ref[...] = jnp.where(out > 0.0, out, alpha * out).astype(out_ref.dtype)


# ----------------------------------------------------------------------------
# Padding / tiling policy
# ----------------------------------------------------------------------------
def _round_up(x, m):
    return ((x + m - 1) // m) * m


def _pad2d(x, rows, cols):
    return jnp.pad(x, ((0, rows - x.shape[0]), (0, cols - x.shape[1])))


def _pad_n(n):
    # Minimal lane-friendly padding for small/medium graphs; coarser for big
    # graphs so large (multiple-of-256) tiles divide evenly.
    return _round_up(n, 128) if n <= 1024 else _round_up(n, 512)


def _largest_divisor_tile(n, cap, gran):
    """Largest multiple of `gran` that divides `n` and is <= cap."""
    best = min(gran, n)
    d = gran
    while d <= min(cap, n):
        if n % d == 0:
            best = d
        d += gran
    return best


def _tiles(n_pad, fout_pad):
    TK = _largest_divisor_tile(n_pad, 1024, 128)    # adj lane dim / h sublane dim
    TM = _largest_divisor_tile(n_pad, 512, 8)       # adj / out sublane dim
    TN = _largest_divisor_tile(fout_pad, 512, 128)  # out lane dim (spans Fout if <=512)
    # v7x megacore: keep >= 2 tiles along a 'parallel' axis when it is cheap.
    if (n_pad // TM) * (fout_pad // TN) == 1 and TM >= 512:
        TM //= 2
    return TM, TN, TK


# ----------------------------------------------------------------------------
# Wrapper
# ----------------------------------------------------------------------------
def prepare_adj(adj, compute_dtype=jnp.bfloat16):
    """Zero-pad + cast the adjacency once; cache and reuse across GCN calls."""
    n = adj.shape[0]
    n_pad = _pad_n(n)
    return _pad2d(adj, n_pad, n_pad).astype(compute_dtype)


def gcn_forward(seq, adj, weight, bias, alpha, *,
                compute_dtype=jnp.bfloat16, out_dtype=jnp.float32):
    """PReLU(adj @ (seq @ weight.T) + bias).

    seq: (N, Fin); adj: raw (N, N) or prepared (N_pad, N_pad) from prepare_adj;
    weight: (Fout, Fin); bias: (Fout,); alpha: PReLU slope scalar.
    Returns (N, Fout) in out_dtype.
    """
    N, fin = seq.shape
    fout = weight.shape[0]

    n_pad = _pad_n(N)
    fin_pad = _round_up(fin, 8)          # full-dim block on this axis (no 128 pad)
    fout_pad = _round_up(fout, 128)
    TM, TN, TK = _tiles(n_pad, fout_pad)

    # ---- operands (adj pad/cast skipped if a prepared adjacency is passed) ----
    if adj.shape == (n_pad, n_pad) and adj.dtype == compute_dtype:
        adj_p = adj
    else:
        adj_p = _pad2d(adj, n_pad, n_pad).astype(compute_dtype)
    seq_p = _pad2d(seq, n_pad, fin_pad).astype(compute_dtype)
    wT_p = _pad2d(weight.T, fin_pad, fout_pad).astype(compute_dtype)
    bias_p = jnp.pad(bias.astype(jnp.float32), (0, fout_pad - fout)).reshape(1, fout_pad)
    alpha1d = jnp.asarray(alpha, jnp.float32).reshape(1)

    itemsize = jnp.dtype(compute_dtype).itemsize

    # ---- kernel 1: h = seq @ W^T (row-tiled; tiny next to kernel 2) ----
    h = pl.pallas_call(
        linear_kernel,
        out_shape=jax.ShapeDtypeStruct((n_pad, fout_pad), compute_dtype),
        grid=(n_pad // TM,),
        in_specs=[
            pl.BlockSpec((TM, fin_pad), lambda i: (i, 0)),
            pl.BlockSpec((fin_pad, fout_pad), lambda i: (0, 0)),
        ],
        out_specs=pl.BlockSpec((TM, fout_pad), lambda i: (i, 0)),
        compiler_params=pltpu.CompilerParams(dimension_semantics=("parallel",)),
        cost_estimate=pl.CostEstimate(
            flops=2 * n_pad * fin_pad * fout_pad,
            transcendentals=0,
            bytes_accessed=(n_pad * fin_pad + fin_pad * fout_pad
                            + n_pad * fout_pad) * itemsize,
        ),
    )(seq_p, wT_p)

    # ---- kernel 2: out = PReLU(adj @ h + bias); 3-D grid, f32 accumulator ----
    grid = (n_pad // TM, fout_pad // TN, n_pad // TK)
    reread_adj = fout_pad // TN    # adj tile re-fetched once per j
    reread_h = n_pad // TM         # h tile re-fetched once per i
    out_p = pl.pallas_call(
        spmm_bias_prelu_kernel,
        out_shape=jax.ShapeDtypeStruct((n_pad, fout_pad), out_dtype),
        grid_spec=pltpu.PrefetchScalarGridSpec(
            num_scalar_prefetch=0,
            grid=grid,
            in_specs=[
                pl.BlockSpec((TM, TK), lambda i, j, k: (i, k)),      # adj tile
                pl.BlockSpec((TK, TN), lambda i, j, k: (k, j)),      # h tile
                pl.BlockSpec((1, TN), lambda i, j, k: (0, j)),       # bias slice
                pl.BlockSpec(memory_space=pltpu.MemorySpace.SMEM),   # alpha scalar
            ],
            out_specs=pl.BlockSpec((TM, TN), lambda i, j, k: (i, j)),
            scratch_shapes=[pltpu.VMEM((TM, TN), jnp.float32)],
        ),
        compiler_params=pltpu.CompilerParams(
            dimension_semantics=("parallel", "parallel", "arbitrary")),
        cost_estimate=pl.CostEstimate(
            flops=2 * n_pad * n_pad * fout_pad,
            transcendentals=0,
            bytes_accessed=(n_pad * n_pad * itemsize * reread_adj
                            + n_pad * fout_pad * itemsize * reread_h
                            + n_pad * fout_pad * jnp.dtype(out_dtype).itemsize
                            + fout_pad * 4),
        ),
    )(adj_p, h, bias_p, alpha1d)

    # Slice padding back off.
    return out_p[:N, :fout]


# ----------------------------------------------------------------------------
# Demo / correctness check
# ----------------------------------------------------------------------------
if __name__ == "__main__":
    # Small shapes consistent with the module: N nodes, in_ft -> out_ft.
    N, in_ft, out_ft = 32, 16, 32

    key = jax.random.PRNGKey(0)
    k_seq, k_adj, k_w = jax.random.split(key, 3)

    seq = jax.random.normal(k_seq, (N, in_ft), dtype=jnp.float32)

    # Symmetric, row-normalized adjacency (dense stand-in for spmm's adj).
    a = (jax.random.uniform(k_adj, (N, N)) > 0.7).astype(jnp.float32)
    a = jnp.maximum(a, a.T) + jnp.eye(N, dtype=jnp.float32)
    adj = a / jnp.sum(a, axis=1, keepdims=True)

    # Parameter init matching __init__:
    #   Linear weight: xavier_uniform_ on (out_ft, in_ft); bias zeros; PReLU 0.25.
    bound = (6.0 / (in_ft + out_ft)) ** 0.5
    weight = jax.random.uniform(k_w, (out_ft, in_ft), jnp.float32, -bound, bound)
    bias = jnp.zeros((out_ft,), jnp.float32)
    alpha = 0.25

    # Pure-JAX reference.
    ref = adj @ (seq @ weight.T) + bias
    ref = jnp.where(ref > 0.0, ref, alpha * ref)

    # f32 path: tight tolerance.
    fwd_f32 = jax.jit(functools.partial(gcn_forward, compute_dtype=jnp.float32))
    out_f32 = jax.block_until_ready(fwd_f32(seq, adj, weight, bias, alpha))
    assert out_f32.shape == (N, out_ft)
    assert jnp.allclose(out_f32, ref, atol=1e-3, rtol=1e-3)

    # bf16-streaming path (optimized default), with the adjacency pad/cast
    # hoisted out of the per-call path and reused.
    adj_prep = prepare_adj(adj, compute_dtype=jnp.bfloat16)
    fwd_bf16 = jax.jit(functools.partial(gcn_forward, compute_dtype=jnp.bfloat16))
    out_bf16 = jax.block_until_ready(fwd_bf16(seq, adj_prep, weight, bias, alpha))
    assert out_bf16.shape == (N, out_ft)
    assert jnp.allclose(out_bf16, ref, atol=3e-2, rtol=3e-2)

    print("KERNEL_OK")
</pallas_src>

<mosaic_0001>
module attributes {stable_mosaic.version = 11 : i64} {
  func.func @spmm_bias_prelu_kernel(%arg0: i32, %arg1: i32, %arg2: i32, %arg3: memref<128x128xf32, #tpu.memory_space<vmem>>, %arg4: memref<128x128xf32, #tpu.memory_space<vmem>>, %arg5: memref<1x128xf32, #tpu.memory_space<vmem>>, %arg6: memref<1xf32, #tpu.memory_space<smem>>, %arg7: memref<128x128xf32, #tpu.memory_space<vmem>>, %arg8: memref<128x128xf32, #tpu.memory_space<vmem>>) attributes {dimension_semantics = [#tpu.dimension_semantics<parallel>, #tpu.dimension_semantics<parallel>, #tpu.dimension_semantics<arbitrary>], iteration_bounds = array<i64: 1, 1, 1>, scalar_prefetch = 0 : i64, scratch_operands = 1 : i64, tpu.core_type = #tpu.core_type<tc>, window_params = [{transform_indices = @transform_0, window_bounds = array<i64: 128, 128>}, {transform_indices = @transform_1, window_bounds = array<i64: 128, 128>}, {transform_indices = @transform_2, window_bounds = array<i64: 1, 128>}, {transform_indices = @transform_3, window_bounds = array<i64: 1>}, {transform_indices = @transform_4, window_bounds = array<i64: 128, 128>}]} {
    %c0_i32 = arith.constant 0 : i32
    %0 = arith.cmpi eq, %arg2, %c0_i32 : i32
    %1 = arith.extui %0 : i1 to i32
    %c0_i32_0 = arith.constant 0 : i32
    %2 = arith.cmpi ne, %1, %c0_i32_0 : i32
    scf.if %2 {
      %cst_10 = arith.constant 0.000000e+00 : f32
      %12 = vector.broadcast %cst_10 : f32 to vector<128x128xf32>
      %c0_11 = arith.constant 0 : index
      %c0_12 = arith.constant 0 : index
      %13 = vector.load %arg8[%c0_11, %c0_12] : memref<128x128xf32, #tpu.memory_space<vmem>>, vector<128x128xf32>
      tpu.vector_store %arg8[%c0_11, %c0_12], %12 {strides = array<i32>} : memref<128x128xf32, #tpu.memory_space<vmem>>, vector<128x128xf32>,
    } else {
    }
    %c0 = arith.constant 0 : index
    %c0_1 = arith.constant 0 : index
    %3 = vector.load %arg8[%c0, %c0_1] : memref<128x128xf32, #tpu.memory_space<vmem>>, vector<128x128xf32>
    %c0_2 = arith.constant 0 : index
    %c0_3 = arith.constant 0 : index
    %4 = vector.load %arg3[%c0_2, %c0_3] : memref<128x128xf32, #tpu.memory_space<vmem>>, vector<128x128xf32>
    %c0_4 = arith.constant 0 : index
    %c0_5 = arith.constant 0 : index
    %5 = vector.load %arg4[%c0_4, %c0_5] : memref<128x128xf32, #tpu.memory_space<vmem>>, vector<128x128xf32>
    %cst = arith.constant dense<0.000000e+00> : vector<128x128xf32>
    %6 = tpu.matmul %4, %5, %cst {dimension_numbers = #tpu.dot_dimension_numbers<[1], [0], [0], [1], [0, 0, 1, 1], [], []>} : vector<128x128xf32>, vector<128x128xf32>, vector<128x128xf32> -> vector<128x128xf32>
    %7 = arith.addf %3, %6 : vector<128x128xf32>
    %c0_6 = arith.constant 0 : index
    %c0_7 = arith.constant 0 : index
    %8 = vector.load %arg8[%c0_6, %c0_7] : memref<128x128xf32, #tpu.memory_space<vmem>>, vector<128x128xf32>
    tpu.vector_store %arg8[%c0_6, %c0_7], %7 {strides = array<i32>} : memref<128x128xf32, #tpu.memory_space<vmem>>, vector<128x128xf32>,
    %c0_i32_8 = arith.constant 0 : i32
    %9 = arith.cmpi eq, %arg2, %c0_i32_8 : i32
    %10 = arith.extui %9 : i1 to i32
    %c0_i32_9 = arith.constant 0 : i32
    %11 = arith.cmpi ne, %10, %c0_i32_9 : i32
    scf.if %11 {
      %c0_10 = arith.constant 0 : index
      %c0_11 = arith.constant 0 : index
      %12 = vector.load %arg8[%c0_10, %c0_11] : memref<128x128xf32, #tpu.memory_space<vmem>>, vector<128x128xf32>
      %c0_12 = arith.constant 0 : index
      %c0_13 = arith.constant 0 : index
      %13 = vector.load %arg5[%c0_12, %c0_13] : memref<1x128xf32, #tpu.memory_space<vmem>>, vector<1x128xf32>
      %14 = vector.broadcast %13 : vector<1x128xf32> to vector<128x128xf32>
      %15 = arith.addf %12, %14 : vector<128x128xf32>
      %c0_14 = arith.constant 0 : index
      %16 = memref.load %arg6[%c0_14] : memref<1xf32, #tpu.memory_space<smem>>
      %cst_15 = arith.constant 0.000000e+00 : f32
      %17 = vector.broadcast %cst_15 : f32 to vector<128x128xf32>
      %18 = arith.cmpf ogt, %15, %17 : vector<128x128xf32>
      %19 = vector.broadcast %16 : f32 to vector<128x128xf32>
      %20 = arith.mulf %19, %15 : vector<128x128xf32>
      %21 = arith.select %18, %15, %20 : vector<128x128xi1>, vector<128x128xf32>
      %c0_16 = arith.constant 0 : index
      %c0_17 = arith.constant 0 : index
      %22 = vector.load %arg7[%c0_16, %c0_17] : memref<128x128xf32, #tpu.memory_space<vmem>>, vector<128x128xf32>
      tpu.vector_store %arg7[%c0_16, %c0_17], %21 {strides = array<i32>} : memref<128x128xf32, #tpu.memory_space<vmem>>, vector<128x128xf32>,
    } else {
    }
    return
  }
  func.func @transform_0(%arg0: i32, %arg1: i32, %arg2: i32) -> (i32, i32) {
    %c0_i32 = arith.constant 0 : i32
    return %arg0, %arg2 : i32, i32
  }
  func.func @transform_1(%arg0: i32, %arg1: i32, %arg2: i32) -> (i32, i32) {
    %c0_i32 = arith.constant 0 : i32
    return %arg2, %arg1 : i32, i32
  }
  func.func @transform_2(%arg0: i32, %arg1: i32, %arg2: i32) -> (i32, i32) {
    %c0_i32 = arith.constant 0 : i32
    %c0_i32_0 = arith.constant 0 : i32
    return %c0_i32, %arg1 : i32, i32
  }
  func.func @transform_3(%arg0: i32, %arg1: i32, %arg2: i32) -> i32 {
    %c0_i32 = arith.constant 0 : i32
    %c0_i32_0 = arith.constant 0 : i32
    return %c0_i32 : i32
  }
  func.func @transform_4(%arg0: i32, %arg1: i32, %arg2: i32) -> (i32, i32) {
    %c0_i32 = arith.constant 0 : i32
    return %arg0, %arg1 : i32, i32
  }
}

module attributes {stable_mosaic.version = 11 : i64} {
  func.func @linear_kernel(%arg0: i32, %arg1: memref<128x16xf32, #tpu.memory_space<vmem>>, %arg2: memref<16x128xf32, #tpu.memory_space<vmem>>, %arg3: memref<128x128xf32, #tpu.memory_space<vmem>>) attributes {dimension_semantics = [#tpu.dimension_semantics<parallel>], iteration_bounds = array<i64: 1>, scalar_prefetch = 0 : i64, scratch_operands = 0 : i64, tpu.core_type = #tpu.core_type<tc>, window_params = [{transform_indices = @transform_0, window_bounds = array<i64: 128, 16>}, {pipeline_mode = #tpu.pipeline_mode<synchronous>, transform_indices = @transform_1, window_bounds = array<i64: 16, 128>}, {transform_indices = @transform_2, window_bounds = array<i64: 128, 128>}]} {
    %c0 = arith.constant 0 : index
    %c0_0 = arith.constant 0 : index
    %0 = vector.load %arg1[%c0, %c0_0] : memref<128x16xf32, #tpu.memory_space<vmem>>, vector<128x16xf32>
    %c0_1 = arith.constant 0 : index
    %c0_2 = arith.constant 0 : index
    %1 = vector.load %arg2[%c0_1, %c0_2] : memref<16x128xf32, #tpu.memory_space<vmem>>, vector<16x128xf32>
    %cst = arith.constant dense<0.000000e+00> : vector<128x128xf32>
    %2 = tpu.matmul %0, %1, %cst {dimension_numbers = #tpu.dot_dimension_numbers<[1], [0], [0], [1], [0, 0, 1, 1], [], []>} : vector<128x16xf32>, vector<16x128xf32>, vector<128x128xf32> -> vector<128x128xf32>
    %c0_3 = arith.constant 0 : index
    %c0_4 = arith.constant 0 : index
    %3 = vector.load %arg3[%c0_3, %c0_4] : memref<128x128xf32, #tpu.memory_space<vmem>>, vector<128x128xf32>
    tpu.vector_store %arg3[%c0_3, %c0_4], %2 {strides = array<i32>} : memref<128x128xf32, #tpu.memory_space<vmem>>, vector<128x128xf32>,
    return
  }
  func.func @transform_0(%arg0: i32) -> (i32, i32) {
    %c0_i32 = arith.constant 0 : i32
    %c0_i32_0 = arith.constant 0 : i32
    return %arg0, %c0_i32 : i32, i32
  }
  func.func @transform_1(%arg0: i32) -> (i32, i32) {
    %c0_i32 = arith.constant 0 : i32
    %c0_i32_0 = arith.constant 0 : i32
    %c0_i32_1 = arith.constant 0 : i32
    return %c0_i32, %c0_i32_0 : i32, i32
  }
  func.func @transform_2(%arg0: i32) -> (i32, i32) {
    %c0_i32 = arith.constant 0 : i32
    %c0_i32_0 = arith.constant 0 : i32
    return %arg0, %c0_i32 : i32, i32
  }
}

</mosaic_0001>

<bundles_post_ra>
// kernel: gcn_forward.3
= control target key start
LH: loop header
LB: loop body
LE: loop exit
PB: predicated region body
PF: predicated region fallthrough
CT: control target
= control target key end

     0   :  { %s723_s1 = inlined_call_operand.vmem [shape: f32[128,128], index: 1, kind: input, shape index: {}]   ;;  %s724_s0 = inlined_call_operand.vmem [shape: f32[128,128], index: 0, kind: input, shape index: {}]   ;;  %s725_s2 = inlined_call_operand.vmem [shape: f32[1,128], index: 2, kind: input, shape index: {}]   ;;  %s726_s3 = inlined_call_operand.<no memory space> [shape: f32[1], index: 3, kind: input, shape index: {}]   ;;  %s727_s4 = inlined_call_operand.vmem [shape: f32[128,128], index: 4, kind: output, shape index: {}]  }
   0x1   :  { %v70_v0 = vld [vmem:[%s723_s1] sm:$0xff]  ;;  %v71_v1 = vld [vmem:[%s723_s1 + $0x8] sm:$0xff]  ;;  %v72_v2 = vld [vmem:[%s723_s1 + $0x10] sm:$0xff]  ;;  %v641_v42 = vstv %s726_s3 }
   0x2   :  { %v464_v3 = vpack.c.bf16 %v71_v1, %v70_v0  ;;  %v73_v4 = vld [vmem:[%s723_s1 + $0x18] sm:$0xff]  ;;  %v74_v6 = vld [vmem:[%s723_s1 + $0x20] sm:$0xff]  ;;  %v75_v7 = vld [vmem:[%s723_s1 + $0x28] sm:$0xff] }
   0x3   :  { %v468_v5 = vpack.c.bf16 %v73_v4, %v72_v2  ;;  %v472_v8 = vpack.c.bf16 %v75_v7, %v74_v6  ;;  %v54_v9 = vld [vmem:[%s724_s0] sm:$0xff]  ;;  %v76_v11 = vld [vmem:[%s723_s1 + $0x30] sm:$0xff]  ;;  %v77_v12 = vld [vmem:[%s723_s1 + $0x38] sm:$0xff] }
   0x4   :  { %465 = vmatprep.subr.bf16.mxu0 %v464_v3  ;;  %496 = vmatprep.subr.bf16.mxu1 %v464_v3  ;;  %v62_v10 = vld [vmem:[%s724_s0 + $0x40] sm:$0xff]  ;;  %v476_v13 = vpack.c.bf16 %v77_v12, %v76_v11  ;;  %v79_v15 = vld [vmem:[%s723_s1 + $0x48] sm:$0xff]  ;;  %v80_v17 = vld [vmem:[%s723_s1 + $0x50] sm:$0xff] }
   0x5   :  { %467 = vmatpush3.bf16.msra.mxu0 %v464_v3  ;;  %504 = vmatpush3.bf16.msra.mxu1 %v464_v3  ;;  %v78_v14 = vld [vmem:[%s723_s1 + $0x40] sm:$0xff]  ;;  %v81_v18 = vld [vmem:[%s723_s1 + $0x58] sm:$0xff]  ;;  %v83_v21 = vld [vmem:[%s723_s1 + $0x68] sm:$0xff] }
   0x6   :  { %469 = vmatprep.subr.bf16.mxu0 %v468_v5  ;;  %497 = vmatprep.subr.bf16.mxu1 %v468_v5  ;;  %v480_v16 = vpack.c.bf16 %v79_v15, %v78_v14  ;;  %v484_v19 = vpack.c.bf16 %v81_v18, %v80_v17  ;;  %v82_v20 = vld [vmem:[%s723_s1 + $0x60] sm:$0xff]  ;;  %v84_v23 = vld [vmem:[%s723_s1 + $0x70] sm:$0xff]  ;;  %v85_v24 = vld [vmem:[%s723_s1 + $0x78] sm:$0xff] }
   0x7   :  { %440 = vmatprep.mubr.f32.mxu0 %v54_v9  ;;  %452 = vmatprep.mubr.f32.mxu1 %v62_v10  ;;  %v488_v22 = vpack.c.bf16 %v83_v21, %v82_v20  ;;  %v492_v25 = vpack.c.bf16 %v85_v24, %v84_v23  ;;  %v55_v26 = vld [vmem:[%s724_s0 + $0x8] sm:$0xff]  ;;  %v56_v28 = vld [vmem:[%s724_s0 + $0x10] sm:$0xff]  ;;  %v57_v30 = vld [vmem:[%s724_s0 + $0x18] sm:$0xff] }
   0x8   :  { %v63_v27 = vld [vmem:[%s724_s0 + $0x48] sm:$0xff]  ;;  %v64_v29 = vld [vmem:[%s724_s0 + $0x50] sm:$0xff]  ;;  %v65_v31 = vld [vmem:[%s724_s0 + $0x58] sm:$0xff] }
   0x9   :  { %471 = vmatpush3.bf16.msra.mxu0 %v468_v5  ;;  %505 = vmatpush3.bf16.msra.mxu1 %v468_v5  ;;  %v58_v32 = vld [vmem:[%s724_s0 + $0x20] sm:$0xff]  ;;  %v59_v34 = vld [vmem:[%s724_s0 + $0x28] sm:$0xff]  ;;  %v60_v36 = vld [vmem:[%s724_s0 + $0x30] sm:$0xff] }
   0xa   :  { %473 = vmatprep.subr.bf16.mxu0 %v472_v8  ;;  %498 = vmatprep.subr.bf16.mxu1 %v472_v8  ;;  %v66_v33 = vld [vmem:[%s724_s0 + $0x60] sm:$0xff]  ;;  %v67_v35 = vld [vmem:[%s724_s0 + $0x68] sm:$0xff]  ;;  %v68_v37 = vld [vmem:[%s724_s0 + $0x70] sm:$0xff] }
   0xb   :  { %v61_v38 = vld [vmem:[%s724_s0 + $0x38] sm:$0xff]  ;;  %v636_v40 = vld [vmem:[%s725_s2] ss:$0 sm:$0xff] }
   0xc   :  { %v69_v39 = vld [vmem:[%s724_s0 + $0x78] sm:$0xff] }
   0xd   :  { %475 = vmatpush3.bf16.msra.mxu0 %v472_v8  ;;  %506 = vmatpush3.bf16.msra.mxu1 %v472_v8 }
   0xe   :  { %477 = vmatprep.subr.bf16.mxu0 %v476_v13  ;;  %499 = vmatprep.subr.bf16.mxu1 %v476_v13 }
  0x11   :  { %479 = vmatpush3.bf16.msra.mxu0 %v476_v13  ;;  %507 = vmatpush3.bf16.msra.mxu1 %v476_v13 }
  0x12   :  { %481 = vmatprep.subr.bf16.mxu0 %v480_v16  ;;  %500 = vmatprep.subr.bf16.mxu1 %v480_v16 }
  0x15   :  { %483 = vmatpush3.bf16.msra.mxu0 %v480_v16  ;;  %508 = vmatpush3.bf16.msra.mxu1 %v480_v16 }
  0x16   :  { %485 = vmatprep.subr.bf16.mxu0 %v484_v19  ;;  %501 = vmatprep.subr.bf16.mxu1 %v484_v19 }
  0x19   :  { %487 = vmatpush3.bf16.msra.mxu0 %v484_v19  ;;  %509 = vmatpush3.bf16.msra.mxu1 %v484_v19 }
  0x1a   :  { %489 = vmatprep.subr.bf16.mxu0 %v488_v22  ;;  %502 = vmatprep.subr.bf16.mxu1 %v488_v22 }
  0x1d   :  { %491 = vmatpush3.bf16.msra.mxu0 %v488_v22  ;;  %510 = vmatpush3.bf16.msra.mxu1 %v488_v22 }
  0x1e   :  { %493 = vmatprep.subr.bf16.mxu0 %v492_v25  ;;  %503 = vmatprep.subr.bf16.mxu1 %v492_v25 }
  0x21   :  { %495 = vmatpush3.bf16.msra.mxu0 %v492_v25  ;;  %511 = vmatpush3.bf16.msra.mxu1 %v492_v25 }
  0x24   :  { %441 = vmatmul.mubr.f32.vlgmr.msra.gmra.mrb[0].mxu0 %v55_v26  ;;  %453 = vmatmul.mubr.f32.vlgmr.msra.gmra.mrb[0].mxu1 %v63_v27 }
  0x25   :  { %443 = vmatprep.mubr.f32.mxu0 %v56_v28  ;;  %455 = vmatprep.mubr.f32.mxu1 %v64_v29 }
  0x28   :  { %444 = vmatmul.mubr.f32.gmra.mrb[2].mxu0 %v57_v30  ;;  %456 = vmatmul.mubr.f32.gmra.mrb[2].mxu1 %v65_v31 }
  0x29   :  { %446 = vmatprep.mubr.f32.mxu0 %v58_v32  ;;  %458 = vmatprep.mubr.f32.mxu1 %v66_v33 }
  0x2c   :  { %447 = vmatmul.mubr.f32.gmra.mrb[4].mxu0 %v59_v34  ;;  %459 = vmatmul.mubr.f32.gmra.mrb[4].mxu1 %v67_v35 }
  0x2d   :  { %449 = vmatprep.mubr.f32.mxu0 %v60_v36  ;;  %461 = vmatprep.mubr.f32.mxu1 %v68_v37 }
  0x30   :  { %450 = vmatmul.mubr.f32.gmra.mrb[6].mxu0 %v61_v38  ;;  %462 = vmatmul.mubr.f32.gmra.mrb[6].mxu1 %v69_v39 }
  0xf7   :  { %v442_v41 = vpop.f32.mrb[0].mxu0  ;;  %v454_v43 = vpop.f32.mrb[0].mxu1 }
  0xf8   :  { %v290_v44 = vadd.f32 %v442_v41, %v636_v40  ;;  %v298_v45 = vadd.f32 %v454_v43, %v636_v40  ;;  %v152_v46 = vpop.f32.mrb[1].mxu0  ;;  %v192_v47 = vpop.f32.mrb[1].mxu1 }
  0xf9   :  { %v289_v48 = vadd.f32 %v636_v40, %v152_v46  ;;  %v297_v49 = vadd.f32 %v636_v40, %v192_v47 }
  0xfa   :  { %vm307_vm0 = vcmp.gt.f32.partialorder %v290_v44, 0.0  ;;  %v324_v50 = vmul.f32 %v641_v42, %v290_v44  ;;  %vm315_vm1 = vcmp.gt.f32.partialorder %v298_v45, 0.0  ;;  %v332_v51 = vmul.f32 %v641_v42, %v298_v45 }
  0xfb   :  { %vm306_vm2 = vcmp.gt.f32.partialorder %v289_v48, 0.0  ;;  %v323_v52 = vmul.f32 %v641_v42, %v289_v48  ;;  %vm314_vm3 = vcmp.gt.f32.partialorder %v297_v49, 0.0  ;;  %v331_v53 = vmul.f32 %v641_v42, %v297_v49  ;;  %v445_v54 = vpop.f32.mrb[2].mxu0  ;;  %v457_v55 = vpop.f32.mrb[2].mxu1 }
  0xfc   :  { %v340_v56 = vsel %vm307_vm0, %v290_v44, %v324_v50  ;;  %v348_v57 = vsel %vm315_vm1, %v298_v45, %v332_v51  ;;  %v292_v58 = vadd.f32 %v445_v54, %v636_v40  ;;  %v300_v59 = vadd.f32 %v457_v55, %v636_v40  ;;  %v162_v60 = vpop.f32.mrb[3].mxu0  ;;  %v202_v61 = vpop.f32.mrb[3].mxu1 }
  0xfd   :  { %356 = vst [vmem:[%s727_s4 + $0x8] sm:$0xff] %v340_v56  ;;  %364 = vst [vmem:[%s727_s4 + $0x48] sm:$0xff] %v348_v57  ;;  %v339_v62 = vsel %vm306_vm2, %v289_v48, %v323_v52  ;;  %v347_v63 = vsel %vm314_vm3, %v297_v49, %v331_v53  ;;  %v291_v0 = vadd.f32 %v636_v40, %v162_v60 }
  0xfe   :  { %v299_v1 = vadd.f32 %v636_v40, %v202_v61  ;;  %355 = vst [vmem:[%s727_s4] sm:$0xff] %v339_v62  ;;  %363 = vst [vmem:[%s727_s4 + $0x40] sm:$0xff] %v347_v63  ;;  %vm309_vm4 = vcmp.gt.f32.partialorder %v292_v58, 0.0  ;;  %v326_v2 = vmul.f32 %v641_v42, %v292_v58  ;;  %vm317_vm5 = vcmp.gt.f32.partialorder %v300_v59, 0.0 }
  0xff   :  { %v334_v3 = vmul.f32 %v641_v42, %v300_v59  ;;  %vm308_vm6 = vcmp.gt.f32.partialorder %v291_v0, 0.0  ;;  %v325_v4 = vmul.f32 %v641_v42, %v291_v0  ;;  %v448_v6 = vpop.f32.mrb[4].mxu0  ;;  %v460_v7 = vpop.f32.mrb[4].mxu1 }
 0x100   :  { %vm316_vm7 = vcmp.gt.f32.partialorder %v299_v1, 0.0  ;;  %v333_v5 = vmul.f32 %v641_v42, %v299_v1  ;;  %v342_v8 = vsel %vm309_vm4, %v292_v58, %v326_v2  ;;  %v294_v10 = vadd.f32 %v448_v6, %v636_v40  ;;  %v172_v12 = vpop.f32.mrb[5].mxu0  ;;  %v212_v13 = vpop.f32.mrb[5].mxu1 }
 0x101   :  { %v350_v9 = vsel %vm317_vm5, %v300_v59, %v334_v3  ;;  %v302_v11 = vadd.f32 %v460_v7, %v636_v40  ;;  %358 = vst [vmem:[%s727_s4 + $0x18] sm:$0xff] %v342_v8  ;;  %v341_v14 = vsel %vm308_vm6, %v291_v0, %v325_v4  ;;  %v293_v16 = vadd.f32 %v636_v40, %v172_v12 }
 0x102   :  { %366 = vst [vmem:[%s727_s4 + $0x58] sm:$0xff] %v350_v9  ;;  %v349_v15 = vsel %vm316_vm7, %v299_v1, %v333_v5  ;;  %v301_v17 = vadd.f32 %v636_v40, %v212_v13  ;;  %357 = vst [vmem:[%s727_s4 + $0x10] sm:$0xff] %v341_v14  ;;  %vm311_vm8 = vcmp.gt.f32.partialorder %v294_v10, 0.0  ;;  %v328_v18 = vmul.f32 %v641_v42, %v294_v10 }
 0x103   :  { %365 = vst [vmem:[%s727_s4 + $0x50] sm:$0xff] %v349_v15  ;;  %vm319_vm9 = vcmp.gt.f32.partialorder %v302_v11, 0.0  ;;  %v336_v19 = vmul.f32 %v641_v42, %v302_v11  ;;  %vm310_vm10 = vcmp.gt.f32.partialorder %v293_v16, 0.0  ;;  %v327_v20 = vmul.f32 %v641_v42, %v293_v16  ;;  %v451_v22 = vpop.f32.mrb[6].mxu0  ;;  %v463_v23 = vpop.f32.mrb[6].mxu1 }
 0x104   :  { %vm318_vm11 = vcmp.gt.f32.partialorder %v301_v17, 0.0  ;;  %v335_v21 = vmul.f32 %v641_v42, %v301_v17  ;;  %v344_v24 = vsel %vm311_vm8, %v294_v10, %v328_v18  ;;  %v296_v26 = vadd.f32 %v451_v22, %v636_v40  ;;  %v182_v28 = vpop.f32.mrb[7].mxu0  ;;  %v222_v29 = vpop.f32.mrb[7].mxu1 }
 0x105   :  { %v352_v25 = vsel %vm319_vm9, %v302_v11, %v336_v19  ;;  %v304_v27 = vadd.f32 %v463_v23, %v636_v40  ;;  %360 = vst [vmem:[%s727_s4 + $0x28] sm:$0xff] %v344_v24  ;;  %v343_v30 = vsel %vm310_vm10, %v293_v16, %v327_v20  ;;  %v295_v32 = vadd.f32 %v636_v40, %v182_v28 }
 0x106   :  { %368 = vst [vmem:[%s727_s4 + $0x68] sm:$0xff] %v352_v25  ;;  %v351_v31 = vsel %vm318_vm11, %v301_v17, %v335_v21  ;;  %v303_v33 = vadd.f32 %v636_v40, %v222_v29  ;;  %359 = vst [vmem:[%s727_s4 + $0x20] sm:$0xff] %v343_v30  ;;  %vm313_vm12 = vcmp.gt.f32.partialorder %v296_v26, 0.0  ;;  %v330_v34 = vmul.f32 %v641_v42, %v296_v26 }
 0x107   :  { %367 = vst [vmem:[%s727_s4 + $0x60] sm:$0xff] %v351_v31  ;;  %vm321_vm13 = vcmp.gt.f32.partialorder %v304_v27, 0.0  ;;  %v338_v35 = vmul.f32 %v641_v42, %v304_v27  ;;  %vm312_vm14 = vcmp.gt.f32.partialorder %v295_v32, 0.0  ;;  %v329_v36 = vmul.f32 %v641_v42, %v295_v32 }
 0x108   :  { %vm320_vm15 = vcmp.gt.f32.partialorder %v303_v33, 0.0  ;;  %v337_v37 = vmul.f32 %v641_v42, %v303_v33  ;;  %v346_v38 = vsel %vm313_vm12, %v296_v26, %v330_v34 }
 0x109   :  { %v354_v39 = vsel %vm321_vm13, %v304_v27, %v338_v35  ;;  %362 = vst [vmem:[%s727_s4 + $0x38] sm:$0xff] %v346_v38  ;;  %v345_v40 = vsel %vm312_vm14, %v295_v32, %v329_v36 }
 0x10a   :  { %370 = vst [vmem:[%s727_s4 + $0x78] sm:$0xff] %v354_v39  ;;  %v353_v41 = vsel %vm320_vm15, %v303_v33, %v337_v37  ;;  %361 = vst [vmem:[%s727_s4 + $0x30] sm:$0xff] %v345_v40 }
 0x10b   :  { %369 = vst [vmem:[%s727_s4 + $0x70] sm:$0xff] %v353_v41 }

// kernel: gcn_forward.2
= control target key start
LH: loop header
LB: loop body
LE: loop exit
PB: predicated region body
PF: predicated region fallthrough
CT: control target
= control target key end

     0   :  { %vm29_vm0 = vcmask 130048   ;;  %s444_s1 = inlined_call_operand.vmem [shape: f32[16,128], index: 1, kind: input, shape index: {}]   ;;  %s445_s0 = inlined_call_operand.vmem [shape: f32[128,16], index: 0, kind: input, shape index: {}]   ;;  %s446_s2 = inlined_call_operand.vmem [shape: f32[128,128], index: 2, kind: output, shape index: {}]  }
   0x1   :  { %v27_v0 = vld [vmem:[%s444_s1] sm:$0xff]  ;;  %v28_v1 = vld [vmem:[%s444_s1 + $0x8] sm:$0xff]  ;;  %v13_v7 = vld [vmem:[%s445_s0 + $0x10] sm:$0xff] }
   0x2   :  { %v11_v2 = vld [vmem:[%s445_s0] sm:$0xff]  ;;  %v305_v3 = vpack.c.bf16 %v28_v1, %v27_v0  ;;  %v12_v5 = vld [vmem:[%s445_s0 + $0x8] sm:$0xff]  ;;  %v21_v8 = vld [vmem:[%s445_s0 + $0x50] sm:$0xff] }
   0x3   :  { %281 = vmatprep.mubr.msk.f32.mxu0 %vm29_vm0, %v11_v2  ;;  %v19_v4 = vld [vmem:[%s445_s0 + $0x40] sm:$0xff]  ;;  %v20_v6 = vld [vmem:[%s445_s0 + $0x48] sm:$0xff]  ;;  %v14_v9 = vld [vmem:[%s445_s0 + $0x18] sm:$0xff] }
   0x4   :  { %293 = vmatprep.mubr.msk.f32.mxu1 %vm29_vm0, %v19_v4  ;;  %306 = vmatprep.subr.bf16.mxu0 %v305_v3  ;;  %v22_v10 = vld [vmem:[%s445_s0 + $0x58] sm:$0xff]  ;;  %v15_v11 = vld [vmem:[%s445_s0 + $0x20] sm:$0xff]  ;;  %v16_v13 = vld [vmem:[%s445_s0 + $0x28] sm:$0xff] }
   0x5   :  { %309 = vmatprep.subr.bf16.mxu1 %v305_v3  ;;  %308 = vmatpush3.bf16.msra.mxu0 %v305_v3  ;;  %v23_v12 = vld [vmem:[%s445_s0 + $0x60] sm:$0xff]  ;;  %v24_v14 = vld [vmem:[%s445_s0 + $0x68] sm:$0xff]  ;;  %v17_v15 = vld [vmem:[%s445_s0 + $0x30] sm:$0xff] }
   0x6   :  { %310 = vmatpush3.bf16.msra.mxu1 %v305_v3  ;;  %v25_v16 = vld [vmem:[%s445_s0 + $0x70] sm:$0xff]  ;;  %v18_v17 = vld [vmem:[%s445_s0 + $0x38] sm:$0xff] }
   0x7   :  { %v26_v18 = vld [vmem:[%s445_s0 + $0x78] sm:$0xff] }
   0x8   :  { %282 = vmatmul.mubr.msk.f32.vlgmr.msra.gmra.mrb[0].mxu0 %vm29_vm0, %v12_v5 }
   0x9   :  { %294 = vmatmul.mubr.msk.f32.vlgmr.msra.gmra.mrb[0].mxu1 %vm29_vm0, %v20_v6  ;;  %284 = vmatprep.mubr.msk.f32.mxu0 %vm29_vm0, %v13_v7 }
   0xa   :  { %296 = vmatprep.mubr.msk.f32.mxu1 %vm29_vm0, %v21_v8 }
   0xc   :  { %285 = vmatmul.mubr.msk.f32.gmra.mrb[2].mxu0 %vm29_vm0, %v14_v9 }
   0xd   :  { %297 = vmatmul.mubr.msk.f32.gmra.mrb[2].mxu1 %vm29_vm0, %v22_v10  ;;  %287 = vmatprep.mubr.msk.f32.mxu0 %vm29_vm0, %v15_v11 }
   0xe   :  { %299 = vmatprep.mubr.msk.f32.mxu1 %vm29_vm0, %v23_v12 }
  0x10   :  { %288 = vmatmul.mubr.msk.f32.gmra.mrb[4].mxu0 %vm29_vm0, %v16_v13 }
  0x11   :  { %300 = vmatmul.mubr.msk.f32.gmra.mrb[4].mxu1 %vm29_vm0, %v24_v14  ;;  %290 = vmatprep.mubr.msk.f32.mxu0 %vm29_vm0, %v17_v15 }
  0x12   :  { %302 = vmatprep.mubr.msk.f32.mxu1 %vm29_vm0, %v25_v16 }
  0x14   :  { %291 = vmatmul.mubr.msk.f32.gmra.mrb[6].mxu0 %vm29_vm0, %v18_v17 }
  0x15   :  { %303 = vmatmul.mubr.msk.f32.gmra.mrb[6].mxu1 %vm29_vm0, %v26_v18 }
  0xdb   :  { %v283_v19 = vpop.f32.mrb[0].mxu0 }
  0xdc   :  { %v295_v20 = vpop.f32.mrb[0].mxu1  ;;  %224 = vst [vmem:[%s446_s2 + $0x8] sm:$0xff] %v283_v19  ;;  %v144_v21 = vpop.f32.mrb[1].mxu0 }
  0xdd   :  { %232 = vst [vmem:[%s446_s2 + $0x48] sm:$0xff] %v295_v20  ;;  %v184_v22 = vpop.f32.mrb[1].mxu1  ;;  %223 = vst [vmem:[%s446_s2] sm:$0xff] %v144_v21 }
  0xde   :  { %231 = vst [vmem:[%s446_s2 + $0x40] sm:$0xff] %v184_v22 }
  0xdf   :  { %v286_v23 = vpop.f32.mrb[2].mxu0 }
  0xe0   :  { %v298_v24 = vpop.f32.mrb[2].mxu1  ;;  %226 = vst [vmem:[%s446_s2 + $0x18] sm:$0xff] %v286_v23  ;;  %v154_v25 = vpop.f32.mrb[3].mxu0 }
  0xe1   :  { %234 = vst [vmem:[%s446_s2 + $0x58] sm:$0xff] %v298_v24  ;;  %v194_v26 = vpop.f32.mrb[3].mxu1  ;;  %225 = vst [vmem:[%s446_s2 + $0x10] sm:$0xff] %v154_v25 }
  0xe2   :  { %233 = vst [vmem:[%s446_s2 + $0x50] sm:$0xff] %v194_v26 }
  0xe3   :  { %v289_v27 = vpop.f32.mrb[4].mxu0 }
  0xe4   :  { %v301_v28 = vpop.f32.mrb[4].mxu1  ;;  %228 = vst [vmem:[%s446_s2 + $0x28] sm:$0xff] %v289_v27  ;;  %v164_v29 = vpop.f32.mrb[5].mxu0 }
  0xe5   :  { %236 = vst [vmem:[%s446_s2 + $0x68] sm:$0xff] %v301_v28  ;;  %v204_v30 = vpop.f32.mrb[5].mxu1  ;;  %227 = vst [vmem:[%s446_s2 + $0x20] sm:$0xff] %v164_v29 }
  0xe6   :  { %235 = vst [vmem:[%s446_s2 + $0x60] sm:$0xff] %v204_v30 }
  0xe7   :  { %v292_v31 = vpop.f32.mrb[6].mxu0 }
  0xe8   :  { %v304_v32 = vpop.f32.mrb[6].mxu1  ;;  %230 = vst [vmem:[%s446_s2 + $0x38] sm:$0xff] %v292_v31  ;;  %v174_v33 = vpop.f32.mrb[7].mxu0 }
  0xe9   :  { %238 = vst [vmem:[%s446_s2 + $0x78] sm:$0xff] %v304_v32  ;;  %v214_v34 = vpop.f32.mrb[7].mxu1  ;;  %229 = vst [vmem:[%s446_s2 + $0x30] sm:$0xff] %v174_v33 }
  0xea   :  { %237 = vst [vmem:[%s446_s2 + $0x70] sm:$0xff] %v214_v34 }

</bundles_post_ra>
